<compile_context>
chip_gen: v5e
topology: v5e:2x2
jax: 0.10.0
libtpu: 0.0.40
codegen_flags: <defaults>
</compile_context>

<pallas_src>
import functools
import math

import jax
import jax.numpy as jnp
from jax.experimental import pallas as pl
from jax.experimental.pallas import tpu as pltpu


def _ffm_concat3_kernel(x1_ref, x2_ref, x3_ref, s1_ref, s2_ref, s3_ref, o_ref,
                        *, c1, c2, c3):
    # x_i: (1, Ci, T) native dtype; s_i: (1, Ci, T) f32; o: (1, C_all, T).
    od = o_ref.dtype
    o_ref[:, 0:c1, :] = (
        x1_ref[...].astype(jnp.float32) * s1_ref[...]).astype(od)
    o_ref[:, c1:c1 + c2, :] = (
        x2_ref[...].astype(jnp.float32) * s2_ref[...]).astype(od)
    o_ref[:, c1 + c2:c1 + c2 + c3, :] = (
        x3_ref[...].astype(jnp.float32) * s3_ref[...]).astype(od)


def _choose_tiling(hw, channels, c_all, in_isz, out_isz,
                   vmem_budget=18 * 1024 * 1024, max_tile=2048):
    """Pick the spatial lane tile.

    Returns (t, hw_pad, scales_resident):
      t               lane tile (multiple of 128)
      hw_pad          padded spatial extent (multiple of t)
      scales_resident True if one (1, Ci, t) scale tile is valid for every
                      spatial block (i.e. t % lcm(Ci) == 0).
    """
    hw128 = -(-hw // 128) * 128
    # Double-buffered per-lane footprint: inputs + output (+ f32 scale tiles,
    # conservatively also counted as double-buffered).
    bytes_per_lane = c_all * (2 * in_isz + 2 * out_isz + 2 * 4)
    max_t = max(128, (vmem_budget // bytes_per_lane) // 128 * 128)
    max_t = min(max_t, max_tile)

    unit = math.lcm(128, math.lcm(*channels))
    cap = min(max_t, hw128)
    if unit <= cap:
        t = (cap // unit) * unit          # scale-resident path
        resident = True
    else:
        t = cap                           # plain 128-multiple tile
        resident = False
    hw_pad = -(-hw // t) * t
    return t, hw_pad, resident


def ffm_concat3(x1, x2, x3, w, *, epsilon=1e-4, out_dtype=None):
    """Weighted fusion + channel concat. x_i: [N, Ci, H, W], w: [C1+C2+C3]."""
    n, c1, h, wd = x1.shape
    n2, c2, h2, w2 = x2.shape
    n3, c3, h3, w3 = x3.shape
    assert (n, h, wd) == (n2, h2, w2) == (n3, h3, w3), "batch/spatial mismatch"
    c_all = c1 + c2 + c3
    hw = h * wd
    if out_dtype is None:
        out_dtype = x1.dtype

    # Normalized fusion weights (tiny scalar work, plain JAX).
    w = w[:c_all].astype(jnp.float32)
    w_norm = w / (jnp.sum(w) + epsilon)

    in_isz = jnp.dtype(x1.dtype).itemsize
    out_isz = jnp.dtype(out_dtype).itemsize
    t, hw_pad, resident = _choose_tiling(hw, (c1, c2, c3), c_all,
                                         in_isz, out_isz)
    nb = hw_pad // t
    scale_len = t if resident else hw_pad

    # Periodic scale maps: scale_i[0, c, j] = w_i[(c*HW + j) % Ci], i.e. the
    # PyTorch flat-.view broadcast.  When `resident`, a single t-wide tile is
    # valid for every spatial block because block starts are multiples of Ci.
    def make_scale(ws, ci):
        cidx = jnp.arange(ci, dtype=jnp.int32)[:, None] * (hw % ci)
        jidx = jnp.arange(scale_len, dtype=jnp.int32)[None, :]
        return ws[(cidx + jidx) % ci][None]

    s1 = make_scale(w_norm[:c1], c1)
    s2 = make_scale(w_norm[c1:c1 + c2], c2)
    s3 = make_scale(w_norm[c1 + c2:], c3)

    # Flat (N, Ci, H*W) views at native dtype (no wrapper up-cast); lane-pad
    # only when H*W is not already a multiple of the chosen tile.
    def flat(x, ci):
        xf = x.reshape(n, ci, hw)
        if hw_pad != hw:
            xf = jnp.pad(xf, ((0, 0), (0, 0), (0, hw_pad - hw)))
        return xf

    x1f, x2f, x3f = flat(x1, c1), flat(x2, c2), flat(x3, c3)

    s_map = (lambda b, i: (0, 0, 0)) if resident else (lambda b, i: (0, 0, b))

    kernel = functools.partial(_ffm_concat3_kernel, c1=c1, c2=c2, c3=c3)
    out = pl.pallas_call(
        kernel,
        out_shape=jax.ShapeDtypeStruct((n, c_all, hw_pad), out_dtype),
        grid_spec=pltpu.PrefetchScalarGridSpec(
            num_scalar_prefetch=0,
            # Spatial tiles leading (the axis v7x shards across its 2 TCs),
            # batch innermost.
            grid=(nb, n),
            in_specs=[
                pl.BlockSpec((1, c1, t), lambda b, i: (i, 0, b)),
                pl.BlockSpec((1, c2, t), lambda b, i: (i, 0, b)),
                pl.BlockSpec((1, c3, t), lambda b, i: (i, 0, b)),
                pl.BlockSpec((1, c1, t), s_map),
                pl.BlockSpec((1, c2, t), s_map),
                pl.BlockSpec((1, c3, t), s_map),
            ],
            out_specs=pl.BlockSpec((1, c_all, t), lambda b, i: (i, 0, b)),
        ),
        compiler_params=pltpu.CompilerParams(
            dimension_semantics=("parallel", "parallel"),
            vmem_limit_bytes=32 * 1024 * 1024),
        cost_estimate=pl.CostEstimate(
            flops=n * c_all * hw_pad,
            transcendentals=0,
            bytes_accessed=(n * c_all * hw_pad * (in_isz + out_isz)
                            + c_all * scale_len * 4)),
    )(x1f, x2f, x3f, s1, s2, s3)

    if hw_pad != hw:
        out = out[:, :, :hw]
    return out.reshape(n, c_all, h, wd)


if __name__ == "__main__":
    key = jax.random.PRNGKey(0)
    k1, k2, k3, kw = jax.random.split(key, 4)

    N, H, W = 2, 16, 16
    C1, C2, C3 = 4, 8, 16
    C_ALL = C1 + C2 + C3

    x1 = jax.random.normal(k1, (N, C1, H, W), dtype=jnp.float32)
    x2 = jax.random.normal(k2, (N, C2, H, W), dtype=jnp.float32)
    x3 = jax.random.normal(k3, (N, C3, H, W), dtype=jnp.float32)
    # nn.Parameter inits to ones; perturb so the test is non-trivial.
    w = jnp.ones((C_ALL,), jnp.float32) + \
        0.1 * jax.random.uniform(kw, (C_ALL,), dtype=jnp.float32)

    out = ffm_concat3(x1, x2, x3, w)
    out = jax.block_until_ready(out)

    # Pure-JAX reference mirroring the PyTorch forward (flat .view semantics).
    eps = 1e-4
    wn = w / (jnp.sum(w) + eps)

    def ref_scale(xi, ws):
        nn_, cc, hh, ww = xi.shape
        return (xi.reshape(nn_, hh, ww, cc) * ws).reshape(nn_, cc, hh, ww)

    ref = jnp.concatenate([ref_scale(x1, wn[:C1]),
                           ref_scale(x2, wn[C1:C1 + C2]),
                           ref_scale(x3, wn[C1 + C2:])], axis=1)

    assert out.shape == (N, C_ALL, H, W), out.shape
    assert jnp.allclose(out, ref, atol=1e-5, rtol=1e-5), \
        float(jnp.max(jnp.abs(out - ref)))
    print("KERNEL_OK")
</pallas_src>

<mosaic_0001>
module attributes {stable_mosaic.version = 11 : i64} {
  func.func @_ffm_concat3_kernel(%arg0: i32, %arg1: i32, %arg2: memref<1x4x256xf32, #tpu.memory_space<vmem>>, %arg3: memref<1x8x256xf32, #tpu.memory_space<vmem>>, %arg4: memref<1x16x256xf32, #tpu.memory_space<vmem>>, %arg5: memref<1x4x256xf32, #tpu.memory_space<vmem>>, %arg6: memref<1x8x256xf32, #tpu.memory_space<vmem>>, %arg7: memref<1x16x256xf32, #tpu.memory_space<vmem>>, %arg8: memref<1x28x256xf32, #tpu.memory_space<vmem>>) attributes {dimension_semantics = [#tpu.dimension_semantics<parallel>, #tpu.dimension_semantics<parallel>], iteration_bounds = array<i64: 1, 2>, scalar_prefetch = 0 : i64, scratch_operands = 0 : i64, tpu.core_type = #tpu.core_type<tc>, window_params = [{transform_indices = @transform_0, window_bounds = array<i64: 1, 4, 256>}, {transform_indices = @transform_1, window_bounds = array<i64: 1, 8, 256>}, {transform_indices = @transform_2, window_bounds = array<i64: 1, 16, 256>}, {pipeline_mode = #tpu.pipeline_mode<synchronous>, transform_indices = @transform_3, window_bounds = array<i64: 1, 4, 256>}, {pipeline_mode = #tpu.pipeline_mode<synchronous>, transform_indices = @transform_4, window_bounds = array<i64: 1, 8, 256>}, {pipeline_mode = #tpu.pipeline_mode<synchronous>, transform_indices = @transform_5, window_bounds = array<i64: 1, 16, 256>}, {transform_indices = @transform_6, window_bounds = array<i64: 1, 28, 256>}]} {
    %c0 = arith.constant 0 : index
    %c0_0 = arith.constant 0 : index
    %c0_1 = arith.constant 0 : index
    %0 = vector.load %arg2[%c0, %c0_0, %c0_1] : memref<1x4x256xf32, #tpu.memory_space<vmem>>, vector<1x4x256xf32>
    %c0_2 = arith.constant 0 : index
    %c0_3 = arith.constant 0 : index
    %c0_4 = arith.constant 0 : index
    %1 = vector.load %arg5[%c0_2, %c0_3, %c0_4] : memref<1x4x256xf32, #tpu.memory_space<vmem>>, vector<1x4x256xf32>
    %2 = arith.mulf %0, %1 : vector<1x4x256xf32>
    %c0_5 = arith.constant 0 : index
    %c0_6 = arith.constant 0 : index
    %c0_7 = arith.constant 0 : index
    %3 = vector.load %arg8[%c0_5, %c0_6, %c0_7] : memref<1x28x256xf32, #tpu.memory_space<vmem>>, vector<1x4x256xf32>
    tpu.vector_store %arg8[%c0_5, %c0_6, %c0_7], %2 {strides = array<i32>} : memref<1x28x256xf32, #tpu.memory_space<vmem>>, vector<1x4x256xf32>,
    %c0_8 = arith.constant 0 : index
    %c0_9 = arith.constant 0 : index
    %c0_10 = arith.constant 0 : index
    %4 = vector.load %arg3[%c0_8, %c0_9, %c0_10] : memref<1x8x256xf32, #tpu.memory_space<vmem>>, vector<1x8x256xf32>
    %c0_11 = arith.constant 0 : index
    %c0_12 = arith.constant 0 : index
    %c0_13 = arith.constant 0 : index
    %5 = vector.load %arg6[%c0_11, %c0_12, %c0_13] : memref<1x8x256xf32, #tpu.memory_space<vmem>>, vector<1x8x256xf32>
    %6 = arith.mulf %4, %5 : vector<1x8x256xf32>
    %c0_14 = arith.constant 0 : index
    %c4 = arith.constant 4 : index
    %c0_15 = arith.constant 0 : index
    %7 = vector.load %arg8[%c0_14, %c4, %c0_15] : memref<1x28x256xf32, #tpu.memory_space<vmem>>, vector<1x8x256xf32>
    tpu.vector_store %arg8[%c0_14, %c4, %c0_15], %6 {strides = array<i32>} : memref<1x28x256xf32, #tpu.memory_space<vmem>>, vector<1x8x256xf32>,
    %c0_16 = arith.constant 0 : index
    %c0_17 = arith.constant 0 : index
    %c0_18 = arith.constant 0 : index
    %8 = vector.load %arg4[%c0_16, %c0_17, %c0_18] : memref<1x16x256xf32, #tpu.memory_space<vmem>>, vector<1x16x256xf32>
    %c0_19 = arith.constant 0 : index
    %c0_20 = arith.constant 0 : index
    %c0_21 = arith.constant 0 : index
    %9 = vector.load %arg7[%c0_19, %c0_20, %c0_21] : memref<1x16x256xf32, #tpu.memory_space<vmem>>, vector<1x16x256xf32>
    %10 = arith.mulf %8, %9 : vector<1x16x256xf32>
    %c0_22 = arith.constant 0 : index
    %c12 = arith.constant 12 : index
    %c0_23 = arith.constant 0 : index
    %11 = vector.load %arg8[%c0_22, %c12, %c0_23] : memref<1x28x256xf32, #tpu.memory_space<vmem>>, vector<1x16x256xf32>
    tpu.vector_store %arg8[%c0_22, %c12, %c0_23], %10 {strides = array<i32>} : memref<1x28x256xf32, #tpu.memory_space<vmem>>, vector<1x16x256xf32>,
    return
  }
  func.func @transform_0(%arg0: i32, %arg1: i32) -> (i32, i32, i32) {
    %c0_i32 = arith.constant 0 : i32
    %c0_i32_0 = arith.constant 0 : i32
    return %arg1, %c0_i32, %arg0 : i32, i32, i32
  }
  func.func @transform_1(%arg0: i32, %arg1: i32) -> (i32, i32, i32) {
    %c0_i32 = arith.constant 0 : i32
    %c0_i32_0 = arith.constant 0 : i32
    return %arg1, %c0_i32, %arg0 : i32, i32, i32
  }
  func.func @transform_2(%arg0: i32, %arg1: i32) -> (i32, i32, i32) {
    %c0_i32 = arith.constant 0 : i32
    %c0_i32_0 = arith.constant 0 : i32
    return %arg1, %c0_i32, %arg0 : i32, i32, i32
  }
  func.func @transform_3(%arg0: i32, %arg1: i32) -> (i32, i32, i32) {
    %c0_i32 = arith.constant 0 : i32
    %c0_i32_0 = arith.constant 0 : i32
    %c0_i32_1 = arith.constant 0 : i32
    %c0_i32_2 = arith.constant 0 : i32
    return %c0_i32, %c0_i32_0, %c0_i32_1 : i32, i32, i32
  }
  func.func @transform_4(%arg0: i32, %arg1: i32) -> (i32, i32, i32) {
    %c0_i32 = arith.constant 0 : i32
    %c0_i32_0 = arith.constant 0 : i32
    %c0_i32_1 = arith.constant 0 : i32
    %c0_i32_2 = arith.constant 0 : i32
    return %c0_i32, %c0_i32_0, %c0_i32_1 : i32, i32, i32
  }
  func.func @transform_5(%arg0: i32, %arg1: i32) -> (i32, i32, i32) {
    %c0_i32 = arith.constant 0 : i32
    %c0_i32_0 = arith.constant 0 : i32
    %c0_i32_1 = arith.constant 0 : i32
    %c0_i32_2 = arith.constant 0 : i32
    return %c0_i32, %c0_i32_0, %c0_i32_1 : i32, i32, i32
  }
  func.func @transform_6(%arg0: i32, %arg1: i32) -> (i32, i32, i32) {
    %c0_i32 = arith.constant 0 : i32
    %c0_i32_0 = arith.constant 0 : i32
    return %arg1, %c0_i32, %arg0 : i32, i32, i32
  }
}

</mosaic_0001>

<bundles_post_ra>
// kernel: tpu_custom_call.1
= control target key start
LH: loop header
LB: loop body
LE: loop exit
PB: predicated region body
PF: predicated region fallthrough
CT: control target
= control target key end

     0   :  { %s1259_s0 = inlined_call_operand.hbm [shape: f32[2,4,256], index: 0, kind: input, shape index: {}]   ;;  %s1260_s1 = inlined_call_operand.hbm [shape: f32[2,8,256], index: 1, kind: input, shape index: {}]   ;;  %s1261_s2 = inlined_call_operand.hbm [shape: f32[2,16,256], index: 2, kind: input, shape index: {}]   ;;  %s1262_s3 = inlined_call_operand.hbm [shape: f32[1,4,256], index: 3, kind: input, shape index: {}]   ;;  %s1263_s4 = inlined_call_operand.hbm [shape: f32[1,8,256], index: 4, kind: input, shape index: {}]   ;;  %s1264_s5 = inlined_call_operand.hbm [shape: f32[1,16,256], index: 5, kind: input, shape index: {}]   ;;  %s1265_s6 = inlined_call_operand.vmem [shape: f32[2,28,256], index: 6, kind: output, shape index: {}]  }
   0x1   :  { %1269 = sst [smem:[#allocation19_spill]] %s1260_s1 }
   0x2   :  { %1270 = sst [smem:[#allocation20_spill]] %s1262_s3 }
   0x3   :  { %1271 = sst [smem:[#allocation21_spill]] %s1263_s4 }
   0x4   :  { %1272 = sst [smem:[#allocation22_spill]] %s1264_s5 }
   0x5   :  { %11 = vsyncpa [#allocation3], 0 }
   0x6   :  { %13 = vsyncpa [#allocation3 + $0x1], 0 }
   0x7   :  { %14 = vsyncpa [#allocation5], 0 }
   0x8   :  { %16 = vsyncpa [#allocation5 + $0x1], 0 }
   0x9   :  { %17 = vsyncpa [#allocation8], 0 }
   0xa   :  { %18 = vsyncpa [#allocation11], 0  ;;  %s1083_s21 = smov 0   ;;  %s1085_s22 = smov 0  }
   0xb   :  { %s1087_s23 = smov 0   ;;  %s1089_s24 = smov 0  }
   0xc   :  { %s1091_s25 = smov 0   ;;  %s1093_s26 = smov 0  }
   0xd LB: > { %1273 = sst [smem:[#allocation16_spill]] %s1029_s23  ;;  %s1266_s27 = sadd.s32 4294967295, %s1041_s26   ;;  %s1041_s26 = sphi %s1093_s26, %s24_s26   ;;  %s1037_s25 = sphi %s1091_s25, %s1292_s25   ;;  %s1033_s24 = sphi %s1089_s24, %s1291_s24   ;;  %s1029_s23 = sphi %s1087_s23, %s1287_s23   ;;  %s1025_s22 = sphi %s1085_s22, %s1290_s22   ;;  %s1021_s21 = sphi %s1083_s21, %s1289_s21  }
   0xe   : > { %p58_p0 = scmp.ne.s32.totalorder %s1025_s22, %s1021_s21  ;;  %p1115_p1 = scmp.eq.s32.totalorder %s1266_s27, 0 }
   0xf   : > { %p672_p2 = scmp.ge.s32.totalorder %s1041_s26, 1  ;;  %p216_p3 = scmp.lt.s32.totalorder %s1041_s26, 3 }
  0x10   : > { %p1123_p4 = por %p1115_p1, %p58_p0  ;;  %s1276_s3 = sld [smem:[#allocation20_spill]] }
  0x11   : > { %p1130_p5 = pnand %p672_p2, %p216_p3  ;;  %s1043_s10 = smov [#allocation7]  }
  0x12   : > { %s230_s11 = sshll.u32 %s1043_s10, 4  ;;  %s33_s13 = sadd.s32 1, %s1037_s25  ;;  %s231_s11 = int_to_ptr.vmem [resolvable:$true] %s230_s11 }
  0x13   : > { %p719_p6 = pneg %p1130_p5  ;;  %p34_p8 = scmp.ge.s32.totalorder %s33_s13, 2 }
  0x14   : > { %s45_s14 = sadd.s32 1, %s1029_s23  ;;  %p52_p9 = scmp.ne.s32.totalorder %s1029_s23, %s1025_s22 }
  0x15   : > { %p1138_p7 = pnand %p719_p6, %p1115_p1  ;;  %p53_p10 = scmp.eq.s32.totalorder %s1041_s26, 0 }
  0x16   : > { %s228_s8 = sshll.u32 %s1276_s3, 4  ;;  %s1294_s13 = smov (%p34_p8, %s33_s13), 0  ;;  %s229_s8 = int_to_ptr.hbm [resolvable:$true] %s228_s8 }
  0x17   : > { %722 = dma.hbm_to_vmem [thread:$0]  (!%p1138_p7), %s229_s8, 128, %s231_s11, [#allocation8]  }
  0x18   : > { %1279 = sst [smem:[#allocation17_spill]] %s1294_s13  ;;  %p54_p11 = por %p53_p10, %p52_p9 }
  0x19   : > { %p742_p12 = scmp.lt.s32.totalorder %s1041_s26, 2  ;;  %s40_s15 = ssub.s32 %s1037_s25, %s1294_s13 }
  0x1a   : > { %s1155_s16 = sand.u32 1, %s1029_s23   ;;  %p43_p13 = scmp.eq.s32.totalorder %s40_s15, 0 }
  0x1b   : > { %p1157_p0 = pnand %p742_p12, %p54_p11  ;;  %s289_s18 = sand.u32 1, %s1041_s26  }
  0x1c   : > { %s680_s19 = sshll.u32 %s1155_s16, 4  ;;  %s698_s21 = sshll.u32 %s1037_s25, 4 }
  0x1d   : > { %s1164_s20 = scalar_select %p43_p13, %s1029_s23, %s45_s14  }
  0x1e   : > { %s1282_s1 = sld [smem:[#allocation19_spill]]  ;;  %s293_s10 = scalar_lea.vmem [#allocation4], %s680_s19 }
  0x1f   : > { %1281 = sst [smem:[#allocation18_spill]] %s1164_s20  ;;  %s304_s11 = sshll.u32 %s293_s10, 4  ;;  %s305_s11 = int_to_ptr.vmem [resolvable:$true] %s304_s11 }
  0x20   : > { %s683_s15 = sshll.u32 %s1155_s16, 5  ;;  %s1171_s3 = scalar_lea.sflag [#allocation5], %s289_s18 }
  0x21   : > { %s1283_s4 = sld [smem:[#allocation21_spill]]  ;;  %s1045_s18 = smov [#allocation10]  }
  0x22   : > { %s1284_s5 = sld [smem:[#allocation22_spill]]  ;;  %s1046_s13 = smov 256  }
  0x23   : > { %s677_s14 = sshll.u32 %s1155_s16, 3  ;;  %s315_s20 = scalar_lea.vmem [#allocation6], %s683_s15 }
  0x24   : > { %s300_s8 = scalar_lea.hbm %s1282_s1, %s698_s21  ;;  %s1044_s21 = smov [#allocation9]  }
  0x25   : > { %s302_s27 = sshll.u32 %s300_s8, 4  ;;  %s242_s19 = sshll.u32 %s1044_s21, 4  ;;  %s303_s27 = int_to_ptr.hbm [resolvable:$true] %s302_s27  ;;  %s243_s19 = int_to_ptr.vmem [resolvable:$true] %s242_s19 }
  0x26   : > { %735 = dma.hbm_to_vmem [thread:$0]  (!%p1157_p0), %s303_s27, 256, %s305_s11, %s1171_s3  }
  0x27   : > { %s240_s30 = sshll.u32 %s1283_s4, 4  ;;  %s253_s27 = sshll.u32 %s1045_s18, 4  ;;  %s241_s30 = int_to_ptr.hbm [resolvable:$true] %s240_s30  ;;  %s254_s27 = int_to_ptr.vmem [resolvable:$true] %s253_s27 }
  0x28   : > { %s251_s10 = sshll.u32 %s1284_s5, 4  ;;  %s1047_s11 = smov 16   ;;  %s252_s10 = int_to_ptr.hbm [resolvable:$true] %s251_s10 }
  0x29   : > { %725 = dma.hbm_to_vmem [thread:$0]  (!%p1138_p7), %s241_s30, 256, %s243_s19, [#allocation8]  }
  0x2a   : > { %728 = dma.hbm_to_vmem [thread:$0]  (!%p1138_p7), %s252_s10, 512, %s254_s27, [#allocation11], %s1046_s13, %s1046_s13, %s1047_s11  }
  0x2b   : > { %s697_s21 = sshll.u32 %s1037_s25, 3  ;;  %s271_s30 = scalar_lea.vmem [#allocation2], %s677_s14 }
  0x2c   : > { %s278_s7 = scalar_lea.hbm %s1259_s0, %s697_s21  ;;  %s282_s19 = sshll.u32 %s271_s30, 4  ;;  %s283_s19 = int_to_ptr.vmem [resolvable:$true] %s282_s19 }
  0x2d   : > { %s280_s8 = sshll.u32 %s278_s7, 4  ;;  %s268_s5 = scalar_lea.sflag [#allocation3], %s1155_s16  ;;  %s281_s8 = int_to_ptr.hbm [resolvable:$true] %s280_s8 }
  0x2e   : > { %732 = dma.hbm_to_vmem [thread:$0]  (!%p1157_p0), %s281_s8, 128, %s283_s19, %s268_s5  }
  0x2f   : > { %s699_s18 = sshll.u32 %s1037_s25, 5  ;;  %s325_s12 = sshll.u32 %s315_s20, 4  ;;  %s326_s12 = int_to_ptr.vmem [resolvable:$true] %s325_s12 }
  0x30   : > { %s322_s23 = scalar_lea.hbm %s1261_s2, %s699_s18  ;;  %337 = sbr.rel (%p1130_p5) target bundleno = 82 (0x52), region = 44 }
  0x31   : > { %s323_s1 = sshll.u32 %s322_s23, 4  ;;  %s339_s4 = sand.u32 (!%p1130_p5), 1, %s1025_s22   ;;  %s324_s1 = int_to_ptr.hbm [resolvable:$true] %s323_s1 }
  0x32   : > { %738 = dma.hbm_to_vmem [thread:$0]  (!%p1157_p0), %s324_s1, 512, %s326_s12, %s1171_s3, %s1046_s13, %s1046_s13, %s1047_s11  }
  0x33   : > { %s687_s16 = sshll.u32 (!%p1130_p5), %s339_s4, 3  ;;  %s340_s5 = scalar_lea.sflag (!%p1130_p5), [#allocation3], %s339_s4 }
  0x34   : > { %s343_s14 = scalar_lea.vmem (!%p1130_p5), [#allocation2], %s687_s16 }
  0x35   : > { %1004 = dma.done.wait (%p1123_p4), %s340_s5, 128  }
  0x36   : > { %1006 = vsyncadd (%p1123_p4), %s340_s5, 4294967168  ;;  %s1285_s20 = sadd.s32 4294967295, %s1041_s26   ;;  %s688_s17 = sshll.u32 %s339_s4, 4 }
  0x37   : > { %s349_s23 = sand.u32 1, %s1285_s20   ;;  %s353_s15 = scalar_lea.vmem [#allocation4], %s688_s17 }
  0x38   : > { %s350_s3 = scalar_lea.sflag [#allocation5], %s349_s23 }
  0x39   : > { %1008 = dma.done.wait (%p1123_p4), %s350_s3, 768  }
  0x3a   : > { %1010 = vsyncadd (%p1123_p4), %s350_s3, 4294966528  ;;  %s689_s9 = sshll.u32 %s339_s4, 5 }
  0x3b   : > { %s363_s13 = scalar_lea.vmem [#allocation6], %s689_s9 }
  0x3c   : > { %1012 = dma.done.wait (%p1115_p1), [#allocation8], 384  }
  0x3d   : > { %1014 = vsyncadd (%p1115_p1), [#allocation8], 4294966912 }
  0x3e   : > { %1016 = dma.done.wait (%p1115_p1), [#allocation11], 512  }
  0x3f   : > { %1018 = vsyncadd (%p1115_p1), [#allocation11], 4294966784  ;;  %p426_p2 = scmp.lt.s32.totalorder %s1033_s24, 1  ;;  %v435_v0 = vld [vmem:[%s343_s14] sm:$0xff]  ;;  %v436_v1 = vld [vmem:[#allocation7] sm:$0xff]  ;;  %vm478_vm0 = vcmask 1043456  }
  0x40   : > { %v446_v2 = vld [vmem:[%s353_s15] sm:$0xff]  ;;  %v437_v3 = vmul.f32 %v436_v1, %v435_v0  ;;  %v448_v4 = vld [vmem:[#allocation9] sm:$0xff]  ;;  %v466_v10 = vld [vmem:[#allocation10] sm:$0xff] }
  0x41   : > { %s1296_s24 = smov (!%p426_p2, %s1033_s24), 1  ;;  %v447_v5 = vld [vmem:[%s353_s15 + $0x8] sm:$0xff]  ;;  %v449_v6 = vld [vmem:[#allocation9 + $0x8] sm:$0xff]  ;;  %v450_v7 = vmul.f32 %v448_v4, %v446_v2  ;;  %v462_v9 = vld [vmem:[%s363_s13] sm:$0xff] }
  0x42   : > { %s700_s29 = sshll.u32 %s1296_s24, 6  ;;  %v451_v8 = vmul.f32 %v449_v6, %v447_v5  ;;  %v463_v11 = vld [vmem:[%s363_s13 + $0x8] sm:$0xff]  ;;  %439 = vst [vmem:[#allocation1] ss:$2 sm:$0xff] %v437_v3  ;;  %v467_v12 = vld [vmem:[#allocation10 + $0x8] sm:$0xff]  ;;  %v464_v13 = vld [vmem:[%s363_s13 + $0x10] sm:$0xff]  ;;  %v470_v17 = vmul.f32 %v466_v10, %v462_v9 }
  0x43   : > { %s1227_s21 = scalar_lea.vmem %s1265_s6, %s700_s29  ;;  %v468_v14 = vld [vmem:[#allocation10 + $0x10] sm:$0xff]  ;;  %v454_v15 = vrot.slane %v450_v7, 4  ;;  %v465_v19 = vld [vmem:[%s363_s13 + $0x18] sm:$0xff]  ;;  %v469_v20 = vld [vmem:[#allocation10 + $0x18] sm:$0xff]  ;;  %v471_v21 = vmul.f32 %v467_v12, %v463_v11 }
  0x44   : > { %v455_v16 = vrot.slane %v451_v8, 4  ;;  %v472_v18 = vmul.f32 %v468_v14, %v464_v13  ;;  %v473_v22 = vmul.f32 %v469_v20, %v465_v19  ;;  %v479_v23 = vrot.slane %v470_v17, 4 }
  0x45   : > { %458 = vst [vmem:[%s1227_s21] sm:$0xf0] %v454_v15  ;;  %v480_v25 = vrot.slane %v471_v21, 4 }
  0x46   : > { %460 = vst [vmem:[%s1227_s21 + $0x10] sm:$0xf] %v454_v15  ;;  %v481_v24 = vrot.slane %v472_v18, 4  ;;  %v483_v26 = vrot.slane %v473_v22, 4 }
  0x47   : > { %459 = vst [vmem:[%s1227_s21 + $0x8] sm:$0xf0] %v455_v16 }
  0x48   : > { %461 = vst [vmem:[%s1227_s21 + $0x18] sm:$0xf] %v455_v16  ;;  %v482_v29 = vsel %vm478_vm0, %v479_v23, %v481_v24  ;;  %v484_v30 = vsel %vm478_vm0, %v480_v25, %v483_v26 }
  0x49   : > { %v440_v27 = vld.sshfl [vmem:[#allocation1] sm:$0xff pattern:$0x75316420]  ;;  %v441_v28 = vld.sshfl [vmem:[#allocation1 + $0x8] sm:$0xff pattern:$0x75316420] }
  0x4a   : > { %444 = vst [vmem:[%s1227_s21] sm:$0xf] %v440_v27 }
  0x4b   : > { %445 = vst [vmem:[%s1227_s21 + $0x8] sm:$0xf] %v441_v28 }
  0x4c   : > { %491 = vst [vmem:[%s1227_s21 + $0x10] sm:$0xf0] %v479_v23 }
  0x4d   : > { %492 = vst [vmem:[%s1227_s21 + $0x18] sm:$0xf0] %v480_v25 }
  0x4e   : > { %493 = vst [vmem:[%s1227_s21 + $0x20] sm:$0xff] %v482_v29 }
  0x4f   : > { %495 = vst [vmem:[%s1227_s21 + $0x30] sm:$0xf] %v481_v24 }
  0x50   : > { %494 = vst [vmem:[%s1227_s21 + $0x28] sm:$0xff] %v484_v30 }
  0x51   : > { %496 = vst [vmem:[%s1227_s21 + $0x38] sm:$0xf] %v483_v26 }
  0x52 PF: > { %s24_s26 = sadd.s32 1, %s1041_s26   ;;  %s1286_s24 = sld [smem:[#allocation16_spill]] }
  0x53   : > { %p21_p1 = scmp.ge.s32.totalorder %s24_s26, 4   ;;  %s1287_s23 = sld [smem:[#allocation18_spill]] }
  0x54   : > { %s1288_s7 = sld [smem:[#allocation17_spill]]  ;;  %s1289_s21 = smov %s1025_s22 }
  0x56   :  { %23 = sbr.rel (!%p21_p1) target bundleno = 13 (0xd), region = 120 }
  0x58   : > { %s1290_s22 = smov %s1286_s24  ;;  %s1291_s24 = smov %s1037_s25 }
  0x5a   : > { %s1292_s25 = smov %s1288_s7 }
  0x5b   :  { %527 = vsyncpa [#allocation3], 1 }
  0x5c   :  { %529 = vsyncpa [#allocation3 + $0x1], 1 }
  0x5d   :  { %530 = vsyncpa [#allocation5], 1 }
  0x5e   :  { %532 = vsyncpa [#allocation5 + $0x1], 1 }
  0x5f   :  { %533 = vsyncpa [#allocation8], 1 }
  0x60   :  { %534 = vsyncpa [#allocation11], 1 }

</bundles_post_ra>
